<compile_context>
chip_gen: v7x
topology: tpu7x:2x2x1
jax: 0.10.0
libtpu: 0.0.40
codegen_flags: <defaults>
</compile_context>

<pallas_src>
import functools

import jax
import jax.numpy as jnp
from jax.experimental import pallas as pl
from jax.experimental.pallas import tpu as pltpu


def _ce_tile_kernel(pred_ref, true_ref, out_ref, *, tile_n, n_total):
    """One batch tile: writes the sum of per-row NLL losses for this tile."""
    i = pl.program_id(0)

    logits = pred_ref[...].astype(jnp.float32)            # (tile_n, C) f32
    labels = true_ref[...]                                 # (tile_n, 1) i32

    # Numerically stable log-softmax; work only with the shifted logits.
    m = jnp.max(logits, axis=-1, keepdims=True)            # (tile_n, 1)
    shifted = logits - m                                    # (tile_n, C)
    lse = jnp.log(jnp.sum(jnp.exp(shifted), axis=-1, keepdims=True))  # (tile_n, 1)

    # Gather the true-class (shifted) logit via a one-hot compare; the +m terms
    # cancel against lse, so we never re-add them (keeps one f32 tile live).
    col = jax.lax.broadcasted_iota(jnp.int32, shifted.shape, 1)        # (tile_n, C)
    onehot = (col == labels).astype(jnp.float32)
    true_shifted = jnp.sum(shifted * onehot, axis=-1, keepdims=True)   # (tile_n, 1)

    losses = lse - true_shifted                             # (tile_n, 1)

    # Mask rows of the last partial tile (garbage beyond N must not contribute).
    row = jax.lax.broadcasted_iota(jnp.int32, losses.shape, 0) + i * tile_n
    losses = jnp.where(row < n_total, losses, 0.0)

    tile_sum = jnp.sum(losses, axis=0, keepdims=True)       # (1, 1)
    out_ref[...] = tile_sum.reshape(1, 1, 1)


def _pick_tile_n(n, c):
    # Keep the f32 working tile around ~1 MiB, cap at 512 rows, multiple of 8.
    rows = max(1, (1 << 20) // max(1, c * 4))
    rows = min(rows, 512, n)
    if rows >= n:
        return n
    return max(8, (rows // 8) * 8)


def my_loss(pred: jax.Array, true: jax.Array, *, tile_n: int | None = None) -> jax.Array:
    """Equivalent of MyLoss().forward(pred, true): mean cross-entropy."""
    n, c = pred.shape
    true2d = true.astype(jnp.int32).reshape(n, 1)

    if tile_n is None:
        tile_n = _pick_tile_n(n, c)
    else:
        tile_n = min(int(tile_n), n)
        if tile_n < n:
            tile_n = max(8, (tile_n // 8) * 8)
    num_tiles = pl.cdiv(n, tile_n)

    # Double-buffered logits/label blocks plus f32 temporaries, with headroom.
    # Explicit so the same kernel is sized correctly for v7x's smaller VMEM.
    vmem_bytes = int(min(48 << 20, max(8 << 20, 8 * tile_n * c * 4)))

    partials = pl.pallas_call(
        functools.partial(_ce_tile_kernel, tile_n=tile_n, n_total=n),
        out_shape=jax.ShapeDtypeStruct((num_tiles, 1, 1), jnp.float32),
        grid=(num_tiles,),
        in_specs=[
            pl.BlockSpec((tile_n, c), lambda i: (i, 0)),
            pl.BlockSpec((tile_n, 1), lambda i: (i, 0)),
        ],
        out_specs=pl.BlockSpec((1, 1, 1), lambda i: (i, 0, 0)),
        compiler_params=pltpu.CompilerParams(
            dimension_semantics=("parallel",),
            vmem_limit_bytes=vmem_bytes,
        ),
    )(pred, true2d)

    return jnp.sum(partials) / jnp.float32(n)


if __name__ == "__main__":
    key = jax.random.PRNGKey(0)
    kp, kl, kp2, kl2 = jax.random.split(key, 4)

    def reference(pred, true):
        p = pred.astype(jnp.float32)
        picked = jnp.take_along_axis(p, true.astype(jnp.int32)[:, None], axis=-1)[:, 0]
        return jnp.mean(jax.nn.logsumexp(p, axis=-1) - picked)

    # cat/dog style classification: batch=8, classes=2 (single tile)
    N, C = 8, 2
    pred = jax.random.normal(kp, (N, C), dtype=jnp.float32)
    true = jax.random.randint(kl, (N,), 0, C, dtype=jnp.int32)
    loss = my_loss(pred, true)
    jax.block_until_ready(loss)
    ref = reference(pred, true)
    assert jnp.allclose(loss, ref, atol=1e-5), (loss, ref)

    # multi-tile path with a partial last tile (exercises masking + parallel grid)
    N2, C2 = 50, 16
    pred2 = jax.random.normal(kp2, (N2, C2), dtype=jnp.float32)
    true2 = jax.random.randint(kl2, (N2,), 0, C2, dtype=jnp.int32)
    loss2 = my_loss(pred2, true2, tile_n=16)
    jax.block_until_ready(loss2)
    ref2 = reference(pred2, true2)
    assert jnp.allclose(loss2, ref2, atol=1e-5), (loss2, ref2)

    print("KERNEL_OK")
</pallas_src>

<mosaic_0001>
module attributes {stable_mosaic.version = 11 : i64} {
  func.func @_ce_tile_kernel(%arg0: i32, %arg1: memref<8x2xf32, #tpu.memory_space<vmem>>, %arg2: memref<8x1xi32, #tpu.memory_space<vmem>>, %arg3: memref<1x1x1xf32, #tpu.memory_space<vmem>>) attributes {dimension_semantics = [#tpu.dimension_semantics<parallel>], iteration_bounds = array<i64: 1>, scalar_prefetch = 0 : i64, scratch_operands = 0 : i64, tpu.core_type = #tpu.core_type<tc>, window_params = [{transform_indices = @transform_0, window_bounds = array<i64: 8, 2>}, {transform_indices = @transform_1, window_bounds = array<i64: 8, 1>}, {transform_indices = @transform_2, window_bounds = array<i64: 1, 1, 1>}]} {
    %c0 = arith.constant 0 : index
    %c0_0 = arith.constant 0 : index
    %0 = vector.load %arg1[%c0, %c0_0] : memref<8x2xf32, #tpu.memory_space<vmem>>, vector<8x2xf32>
    %c0_1 = arith.constant 0 : index
    %c0_2 = arith.constant 0 : index
    %1 = vector.load %arg2[%c0_1, %c0_2] : memref<8x1xi32, #tpu.memory_space<vmem>>, vector<8x1xi32>
    %cst = arith.constant dense<0xFF800000> : vector<8xf32>
    %2 = vector.multi_reduction <maximumf>, %0, %cst [1] : vector<8x2xf32> to vector<8xf32>
    %3 = vector.shape_cast %2 : vector<8xf32> to vector<8x1xf32>
    %4 = vector.broadcast %3 : vector<8x1xf32> to vector<8x2xf32>
    %5 = arith.subf %0, %4 : vector<8x2xf32>
    %6 = math.exp %5 : vector<8x2xf32>
    %cst_3 = arith.constant dense<0.000000e+00> : vector<8xf32>
    %7 = vector.multi_reduction <add>, %6, %cst_3 [1] : vector<8x2xf32> to vector<8xf32>
    %8 = vector.shape_cast %7 : vector<8xf32> to vector<8x1xf32>
    %9 = math.log %8 : vector<8x1xf32>
    %10 = tpu.iota {dimensions = array<i32: 1>} : vector<8x2xi32>
    %11 = vector.broadcast %1 : vector<8x1xi32> to vector<8x2xi32>
    %12 = arith.cmpi eq, %10, %11 : vector<8x2xi32>
    %13 = arith.extui %12 : vector<8x2xi1> to vector<8x2xi32>
    %14 = arith.sitofp %13 : vector<8x2xi32> to vector<8x2xf32>
    %15 = arith.mulf %5, %14 : vector<8x2xf32>
    %cst_4 = arith.constant dense<0.000000e+00> : vector<8xf32>
    %16 = vector.multi_reduction <add>, %15, %cst_4 [1] : vector<8x2xf32> to vector<8xf32>
    %17 = vector.shape_cast %16 : vector<8xf32> to vector<8x1xf32>
    %18 = arith.subf %9, %17 : vector<8x1xf32>
    %19 = tpu.iota {dimensions = array<i32: 0>} : vector<8x1xi32>
    %c8_i32 = arith.constant 8 : i32
    %20 = arith.muli %arg0, %c8_i32 : i32
    %21 = vector.broadcast %20 : i32 to vector<8x1xi32>
    %22 = arith.addi %19, %21 : vector<8x1xi32>
    %c8_i32_5 = arith.constant 8 : i32
    %23 = vector.broadcast %c8_i32_5 : i32 to vector<8x1xi32>
    %24 = arith.cmpi slt, %22, %23 : vector<8x1xi32>
    %cst_6 = arith.constant 0.000000e+00 : f32
    %25 = vector.broadcast %cst_6 : f32 to vector<8x1xf32>
    %26 = arith.select %24, %18, %25 : vector<8x1xi1>, vector<8x1xf32>
    %cst_7 = arith.constant dense<0.000000e+00> : vector<1xf32>
    %27 = vector.multi_reduction <add>, %26, %cst_7 [0] : vector<8x1xf32> to vector<1xf32>
    %28 = vector.shape_cast %27 : vector<1xf32> to vector<1x1xf32>
    %29 = vector.shape_cast %28 : vector<1x1xf32> to vector<1x1x1xf32>
    %c0_8 = arith.constant 0 : index
    %c0_9 = arith.constant 0 : index
    %c0_10 = arith.constant 0 : index
    %30 = vector.load %arg3[%c0_8, %c0_9, %c0_10] : memref<1x1x1xf32, #tpu.memory_space<vmem>>, vector<1x1x1xf32>
    tpu.vector_store %arg3[%c0_8, %c0_9, %c0_10], %29 {strides = array<i32>} : memref<1x1x1xf32, #tpu.memory_space<vmem>>, vector<1x1x1xf32>,
    return
  }
  func.func @transform_0(%arg0: i32) -> (i32, i32) {
    %c0_i32 = arith.constant 0 : i32
    %c0_i32_0 = arith.constant 0 : i32
    return %arg0, %c0_i32 : i32, i32
  }
  func.func @transform_1(%arg0: i32) -> (i32, i32) {
    %c0_i32 = arith.constant 0 : i32
    %c0_i32_0 = arith.constant 0 : i32
    return %arg0, %c0_i32 : i32, i32
  }
  func.func @transform_2(%arg0: i32) -> (i32, i32, i32) {
    %c0_i32 = arith.constant 0 : i32
    %c0_i32_0 = arith.constant 0 : i32
    %c0_i32_1 = arith.constant 0 : i32
    return %arg0, %c0_i32, %c0_i32_0 : i32, i32, i32
  }
}

</mosaic_0001>

<bundles_post_ra>
// kernel: tpu_custom_call.1
= control target key start
LH: loop header
LB: loop body
LE: loop exit
PB: predicated region body
PF: predicated region fallthrough
CT: control target
= control target key end

     0   :  { %vm14_vm0 = vcmask 15360   ;;  %s140_s0 = inlined_call_operand.vmem [shape: f32[8,2], index: 0, kind: input, shape index: {}]   ;;  %s141_s1 = inlined_call_operand.vmem [shape: s32[8,1], index: 1, kind: input, shape index: {}]   ;;  %s142_s2 = inlined_call_operand.hbm [shape: f32[1,1,1], index: 2, kind: output, shape index: {}]  }
   0x1   :  { %v12_v0 = vld [vmem:[%s140_s0] sm:$0xff] }
   0x2   :  { %7 = vsyncpa [#allocation3], 0  ;;  %v15_v1 = vsel %vm14_vm0, %v12_v0, -inf  ;;  %v101_v2 = vmov 0   ;;  %v13_v3 = vld [vmem:[%s141_s1] sm:$0xff]  ;;  %v26_v6 = vlaneseq  ;;  %v102_v10 = vmov 0.0  }
   0x3   :  { %72 = vset.pattern.permute.xlu0 %v101_v2  ;;  %s103_s0 = smov [#allocation2]   ;;  %vm52_vm2 = vcmask 0  }
   0x4   :  { %16 = vmax.xlane.f32.xlu0 %v15_v1  ;;  %v27_v8 = vand.u32 127, %v26_v6  ;;  %s60_s1 = sshll.u32 %s103_s0, 4  ;;  %s61_s1 = int_to_ptr.vmem [resolvable:$true] %s60_s1 }
   0x5   :  { %s77_s13 = scalar_lea.vmem %s61_s1, 16  ;;  %s81_s14 = scalar_lea.vmem %s61_s1, 32 }
   0x6   :  { %p78_p0 = scmp.ne.s32.totalorder %s61_s1, %s77_s13  ;;  %p82_p1 = scmp.lt.s32.totalorder %s61_s1, %s61_s1 }
   0x7   :  { %p83_p2 = scmp.lt.s32.totalorder %s81_s14, %s77_s13 }
   0x9   :  { %p84_p3 = por %p83_p2, %p82_p1 }
   0xb   :  { %p85_p4 = pnand %p84_p3, %p78_p0 }
  0x1a   :  { %29 = vperm.xlu0 %72, %v13_v3  }
  0x91   :  { %v17_v4 = vpop.xlane.xlu0 %16 }
  0x92   :  { %v18_v5 = vsub.f32 %v12_v0, %v17_v4 }
  0x94   :  { %v19_v7 = vmul.f32 1.442695, %v18_v5 }
  0x96   :  { %73 = vpow2.f32 %v19_v7 }
  0x99   :  { %v30_v9 = vpop.permute.xlu0 %29 }
  0x9a   :  { %vm31_vm1 = vcmp.eq.s32.totalorder %v27_v8, %v30_v9 }
  0x9b   :  { %v68_v11 = vsel %vm31_vm1, 1.0, %v102_v10 }
  0x9c   :  { %v34_v14 = vmul.f32 %v68_v11, %v18_v5 }
  0x9e   :  { %v35_v15 = vsel %vm14_vm0, %v34_v14, 0.0 }
  0xa0   :  { %v74_v12 = vpop.eup %73 }
  0xa1   :  { %v21_v13 = vsel %vm14_vm0, %v74_v12, 0.0 }
  0xa2   :  { %22 = vadd.xlane.f32.xlu1 %v21_v13 }
  0xa6   :  { %36 = vadd.xlane.f32.xlu1 %v35_v15 }
 0x12f   :  { %v23_v16 = vpop.xlane.xlu1 %22 }
 0x130   :  { %75 = vlog2.f32 %v23_v16 }
 0x133   :  { %v37_v19 = vpop.xlane.xlu1 %36 }
 0x13a   :  { %v76_v17 = vpop.eup %75 }
 0x13b   :  { %v25_v18 = vmul.f32 0.6931472, %v76_v17 }
 0x13d   :  { %v38_v20 = vsub.f32 %v25_v18, %v37_v19 }
 0x13f   :  { %v46_v21 = vrot.slane %v38_v20, 4 }
 0x141   :  { %v47_v22 = vadd.f32 %v46_v21, %v38_v20 }
 0x143   :  { %v48_v23 = vrot.slane %v47_v22, 2 }
 0x145   :  { %v49_v24 = vadd.f32 %v48_v23, %v47_v22 }
 0x147   :  { %v50_v25 = vrot.slane %v49_v24, 1 }
 0x149   :  { %v51_v26 = vadd.f32 %v50_v25, %v49_v24 }
 0x14b   :  { %53 = vst.msk [vmem:[#allocation2] sm:$0x1] %vm52_vm2, %v51_v26 }
 0x14c   :  { %88 = shalt.err (!%p85_p4)
}
 0x14d   :  { %s89_s17 = scalar_lea.hbm %s142_s2, 16 }
 0x14e   :  { %p90_p5 = scmp.ne.s32.totalorder %s142_s2, %s89_s17  ;;  %p93_p6 = scmp.lt.u32.totalorder %s89_s17, %s142_s2 }
 0x150   :  { %p95_p7 = pnand %p93_p6, %p90_p5 }
 0x152   :  { %98 = shalt.err (!%p95_p7)
}
 0x153   :  { %63 = dma.vmem_to_hbm [thread:$0]  %s61_s1, 16, %s142_s2, [#allocation3]  }
 0x154   :  { %99 = dma.done.wait [#allocation3], 16  }
 0x155   :  { %100 = vsyncadd [#allocation3], 4294967280 }
 0x156   :  { %67 = vsyncpa [#allocation3], 1 }

</bundles_post_ra>
